<compile_context>
chip_gen: v7x
topology: tpu7x:2x2x1
jax: 0.10.0
libtpu: 0.0.40
codegen_flags: <defaults>
</compile_context>

<pallas_src>
import jax
import jax.numpy as jnp
from jax.experimental import pallas as pl
from jax.experimental.pallas import tpu as pltpu


# --------------------------------------------------------------------------
# Fused kernel (one grid step = one (batch, time-tile) block):
#   zc   : (D1, 2*K^2)  = [z_re | z_im]      -- resident (constant block index)
#   trig : (2*K^2, C)   = [cos ; sin]        -- resident (constant block index)
#   x    : (C, tT)      -- native-layout tile of X[b, :, t*tT : (t+1)*tT]
#   o    : (D1, tT)     -- native-layout tile of out[b, :, ...]
# --------------------------------------------------------------------------
def fused_spatial_attention_kernel(zc_ref, trig_ref, x_ref, o_ref):
    # Batch-invariant spatial-attention weights, recomputed per step (tiny).
    a = jnp.dot(zc_ref[...], trig_ref[...], preferred_element_type=jnp.float32)
    a = a - jnp.max(a, axis=-1, keepdims=True)
    e = jnp.exp(a)
    denom = jnp.sum(e, axis=-1, keepdims=True)
    # approx=False -> exact divide (not the EUP vrcp fast path); needed for 1e-5 tol.
    wts = e * pl.reciprocal(denom, approx=False)
    # TODO(synk): SpatialDropout (training-only, location-based channel drop) is
    # identity in eval mode, so it is omitted here.
    o_ref[...] = jnp.dot(
        wts, x_ref[...], preferred_element_type=jnp.float32
    ).astype(o_ref.dtype)


def _pick_time_tile(T, C, D1, max_tile=2048):
    """Full T if it fits under the cap, else the largest 128-multiple tile that
    also keeps the double-buffered f32 in+out tiles under ~8 MiB of VMEM."""
    if T <= max_tile:
        return T
    budget_bytes = 8 * 1024 * 1024
    t_budget = budget_bytes // (2 * (C + D1) * 4)  # 2x buffering, f32
    t = min(max_tile, t_budget)
    return max(128, (t // 128) * 128)


def spatial_attention_forward(z_re, z_im, cos, sin, X):
    B, C, T = X.shape
    D1, K2 = z_re.shape

    # Fuse the two weight matmuls into one MXU pass: [z_re | z_im] @ [cos ; sin].
    zc = jnp.concatenate([z_re, z_im], axis=1)    # (D1, 2*K2)
    trig = jnp.concatenate([cos, sin], axis=0)    # (2*K2, C)

    tT = _pick_time_tile(T, C, D1)
    grid = (B, pl.cdiv(T, tT))

    # Explicit scoped-VMEM limit: double-buffered X/out tiles + resident zc/trig
    # blocks, plus headroom; clamped to a range safe on v5e / v6e / v7x.
    vmem_bytes = 4 * (2 * (C + D1) * tT + 2 * (zc.size + trig.size)) + (4 << 20)
    vmem_bytes = int(min(max(vmem_bytes, 16 << 20), 32 << 20))

    return pl.pallas_call(
        fused_spatial_attention_kernel,
        out_shape=jax.ShapeDtypeStruct((B, D1, T), X.dtype),
        grid=grid,
        in_specs=[
            pl.BlockSpec((D1, 2 * K2), lambda b, t: (0, 0)),      # zc, resident
            pl.BlockSpec((2 * K2, C), lambda b, t: (0, 0)),       # trig, resident
            pl.BlockSpec((None, C, tT), lambda b, t: (b, 0, t)),  # X tile (native)
        ],
        out_specs=pl.BlockSpec((None, D1, tT), lambda b, t: (b, 0, t)),
        compiler_params=pltpu.CompilerParams(
            dimension_semantics=("parallel", "parallel"),
            vmem_limit_bytes=vmem_bytes,
        ),
    )(zc, trig, X)


def reference_forward(z_re, z_im, cos, sin, X):
    a = z_re @ cos + z_im @ sin
    wts = jax.nn.softmax(a, axis=-1)
    return jnp.einsum("oi,bit->bot", wts, X)


if __name__ == "__main__":
    # Small shapes consistent with the module
    B, C, T = 2, 16, 32        # batch, electrodes/channels, time
    D1, K = 8, 4               # output channels, fourier order
    K2 = K * K

    key = jax.random.PRNGKey(0)
    k_zr, k_zi, k_x = jax.random.split(key, 3)

    # z = torch.rand(D1, K^2, cfloat): real & imag uniform [0,1)
    z_re = jax.random.uniform(k_zr, (D1, K2), dtype=jnp.float32)
    z_im = jax.random.uniform(k_zi, (D1, K2), dtype=jnp.float32)

    # Deterministic synthetic ch_locations_2d: 4x4 grid of C channels in [0,1]^2
    gx, gy = jnp.meshgrid(jnp.linspace(0.0, 1.0, 4), jnp.linspace(0.0, 1.0, 4),
                          indexing="ij")
    loc_x = gx.reshape(-1).astype(jnp.float32)   # (C,)
    loc_y = gy.reshape(-1).astype(jnp.float32)   # (C,)

    # a = [(k,l) for k in range(K) for l in range(K)]
    kk, ll = jnp.meshgrid(jnp.arange(K), jnp.arange(K), indexing="ij")
    k_idx = kk.reshape(-1).astype(jnp.float32)   # (K^2,)
    l_idx = ll.reshape(-1).astype(jnp.float32)   # (K^2,)

    phi = 2.0 * jnp.pi * (jnp.outer(k_idx, loc_x) + jnp.outer(l_idx, loc_y))  # (K^2, C)
    cos = jnp.cos(phi)
    sin = jnp.cos(phi)   # module bug reproduced intentionally: self.sin = torch.cos(phi)

    X = jax.random.normal(k_x, (B, C, T), dtype=jnp.float32)

    out = spatial_attention_forward(z_re, z_im, cos, sin, X)
    out = jax.block_until_ready(out)

    ref = reference_forward(z_re, z_im, cos, sin, X)
    assert out.shape == (B, D1, T)
    assert jnp.allclose(out, ref, atol=1e-5, rtol=1e-5), "mismatch vs pure-JAX reference"

    print("KERNEL_OK")
</pallas_src>

<mosaic_0001>
module attributes {stable_mosaic.version = 11 : i64} {
  func.func @fused_spatial_attention_kernel(%arg0: i32, %arg1: i32, %arg2: memref<8x32xf32, #tpu.memory_space<vmem>>, %arg3: memref<32x16xf32, #tpu.memory_space<vmem>>, %arg4: memref<1x16x32xf32, #tpu.memory_space<vmem>>, %arg5: memref<1x8x32xf32, #tpu.memory_space<vmem>>) attributes {dimension_semantics = [#tpu.dimension_semantics<parallel>, #tpu.dimension_semantics<parallel>], iteration_bounds = array<i64: 2, 1>, scalar_prefetch = 0 : i64, scratch_operands = 0 : i64, tpu.core_type = #tpu.core_type<tc>, window_params = [{pipeline_mode = #tpu.pipeline_mode<synchronous>, transform_indices = @transform_0, window_bounds = array<i64: 8, 32>}, {pipeline_mode = #tpu.pipeline_mode<synchronous>, transform_indices = @transform_1, window_bounds = array<i64: 32, 16>}, {transform_indices = @transform_2, window_bounds = array<i64: 1, 16, 32>}, {transform_indices = @transform_3, window_bounds = array<i64: 1, 8, 32>}]} {
    %c0 = arith.constant 0 : index
    %c0_0 = arith.constant 0 : index
    %0 = vector.load %arg2[%c0, %c0_0] : memref<8x32xf32, #tpu.memory_space<vmem>>, vector<8x32xf32>
    %c0_1 = arith.constant 0 : index
    %c0_2 = arith.constant 0 : index
    %1 = vector.load %arg3[%c0_1, %c0_2] : memref<32x16xf32, #tpu.memory_space<vmem>>, vector<32x16xf32>
    %cst = arith.constant dense<0.000000e+00> : vector<8x16xf32>
    %2 = tpu.matmul %0, %1, %cst {dimension_numbers = #tpu.dot_dimension_numbers<[1], [0], [0], [1], [0, 0, 1, 1], [], []>} : vector<8x32xf32>, vector<32x16xf32>, vector<8x16xf32> -> vector<8x16xf32>
    %cst_3 = arith.constant dense<0xFF800000> : vector<8xf32>
    %3 = vector.multi_reduction <maximumf>, %2, %cst_3 [1] : vector<8x16xf32> to vector<8xf32>
    %4 = vector.shape_cast %3 : vector<8xf32> to vector<8x1xf32>
    %5 = vector.broadcast %4 : vector<8x1xf32> to vector<8x16xf32>
    %6 = arith.subf %2, %5 : vector<8x16xf32>
    %7 = math.exp %6 : vector<8x16xf32>
    %cst_4 = arith.constant dense<0.000000e+00> : vector<8xf32>
    %8 = vector.multi_reduction <add>, %7, %cst_4 [1] : vector<8x16xf32> to vector<8xf32>
    %9 = vector.shape_cast %8 : vector<8xf32> to vector<8x1xf32>
    %10 = tpu.reciprocal %9 : vector<8x1xf32> -> vector<8x1xf32>
    %11 = vector.broadcast %10 : vector<8x1xf32> to vector<8x16xf32>
    %12 = arith.mulf %7, %11 : vector<8x16xf32>
    %c0_5 = arith.constant 0 : index
    %c0_6 = arith.constant 0 : index
    %c0_7 = arith.constant 0 : index
    %13 = vector.load %arg4[%c0_5, %c0_6, %c0_7] : memref<1x16x32xf32, #tpu.memory_space<vmem>>, vector<1x16x32xf32>
    %14 = vector.shape_cast %13 : vector<1x16x32xf32> to vector<16x32xf32>
    %cst_8 = arith.constant dense<0.000000e+00> : vector<8x32xf32>
    %15 = tpu.matmul %12, %14, %cst_8 {dimension_numbers = #tpu.dot_dimension_numbers<[1], [0], [0], [1], [0, 0, 1, 1], [], []>} : vector<8x16xf32>, vector<16x32xf32>, vector<8x32xf32> -> vector<8x32xf32>
    %c0_9 = arith.constant 0 : index
    %c0_10 = arith.constant 0 : index
    %c0_11 = arith.constant 0 : index
    %16 = vector.load %arg5[%c0_9, %c0_10, %c0_11] : memref<1x8x32xf32, #tpu.memory_space<vmem>>, vector<1x8x32xf32>
    %17 = vector.shape_cast %16 : vector<1x8x32xf32> to vector<8x32xf32>
    %18 = vector.shape_cast %15 : vector<8x32xf32> to vector<1x8x32xf32>
    tpu.vector_store %arg5[%c0_9, %c0_10, %c0_11], %18 {strides = array<i32>} : memref<1x8x32xf32, #tpu.memory_space<vmem>>, vector<1x8x32xf32>,
    return
  }
  func.func @transform_0(%arg0: i32, %arg1: i32) -> (i32, i32) {
    %c0_i32 = arith.constant 0 : i32
    %c0_i32_0 = arith.constant 0 : i32
    %c0_i32_1 = arith.constant 0 : i32
    return %c0_i32, %c0_i32_0 : i32, i32
  }
  func.func @transform_1(%arg0: i32, %arg1: i32) -> (i32, i32) {
    %c0_i32 = arith.constant 0 : i32
    %c0_i32_0 = arith.constant 0 : i32
    %c0_i32_1 = arith.constant 0 : i32
    return %c0_i32, %c0_i32_0 : i32, i32
  }
  func.func @transform_2(%arg0: i32, %arg1: i32) -> (i32, i32, i32) {
    %c0_i32 = arith.constant 0 : i32
    %c0_i32_0 = arith.constant 0 : i32
    return %arg0, %c0_i32, %arg1 : i32, i32, i32
  }
  func.func @transform_3(%arg0: i32, %arg1: i32) -> (i32, i32, i32) {
    %c0_i32 = arith.constant 0 : i32
    %c0_i32_0 = arith.constant 0 : i32
    return %arg0, %c0_i32, %arg1 : i32, i32, i32
  }
}

</mosaic_0001>

<bundles_post_ra>
// kernel: tpu_custom_call.1
= control target key start
LH: loop header
LB: loop body
LE: loop exit
PB: predicated region body
PF: predicated region fallthrough
CT: control target
= control target key end

     0   :  { %8 = vsyncpa [#allocation3], 0  ;;  %s798_s0 = inlined_call_operand.vmem [shape: f32[8,32], index: 0, kind: input, shape index: {}]   ;;  %s799_s1 = inlined_call_operand.vmem [shape: f32[32,16], index: 1, kind: input, shape index: {}]   ;;  %s800_s2 = inlined_call_operand.vmem [shape: f32[2,16,32], index: 2, kind: input, shape index: {}]   ;;  %s801_s3 = inlined_call_operand.hbm [shape: f32[2,8,32], index: 3, kind: output, shape index: {}]  }
   0x1   :  { %10 = vsyncpa [#allocation3 + $0x1], 0  ;;  %s666_s12 = smov 0   ;;  %s668_s13 = smov 0  }
   0x2   :  { %s670_s14 = smov 0   ;;  %s672_s15 = smov 0  }
   0x3   :  { %s674_s16 = smov 0   ;;  %s676_s17 = smov 0  }
   0x4 LB: > { %s450_s18 = sadd.s32 4294967295, %s640_s17   ;;  %s451_s19 = sadd.s32 4294967294, %s640_s17   ;;  %s640_s17 = sphi %s676_s17, %s16_s17   ;;  %s636_s16 = sphi %s674_s16, %s808_s16   ;;  %s632_s15 = sphi %s672_s15, %s807_s15   ;;  %s628_s14 = sphi %s670_s14, %s806_s14   ;;  %s624_s13 = sphi %s668_s13, %s805_s13   ;;  %s620_s12 = sphi %s666_s12, %s804_s12  }
   0x5   : > { %s28_s20 = sadd.s32 1, %s636_s16  ;;  %s107_s21 = sadd.s32 1, %s628_s14 }
   0x6   : > { %p30_p0 = scmp.ge.s32.totalorder %s28_s20, 2  ;;  %p117_p1 = scmp.ne.s32.totalorder %s628_s14, %s624_s13 }
   0x7   : > { %p118_p2 = scmp.eq.s32.totalorder %s450_s18, 1  ;;  %p123_p3 = scmp.ne.s32.totalorder %s624_s13, %s620_s12 }
   0x8   : > { %s810_s20 = smov (%p30_p0, %s28_s20), 0  ;;  %p124_p5 = scmp.eq.s32.totalorder %s451_s19, 1 }
   0x9   : > { %p706_p4 = por %p118_p2, %p117_p1  ;;  %s102_s23 = ssub.s32 %s636_s16, %s810_s20 }
   0xa   : > { %p454_p6 = scmp.ge.s32.totalorder %s640_s17, 1  ;;  %p105_p7 = scmp.eq.s32.totalorder %s102_s23, 0 }
   0xb   : > { %p713_p8 = por %p124_p5, %p123_p3  ;;  %p159_p9 = scmp.lt.s32.totalorder %s640_s17, 3 }
   0xc   : > { %s719_s25 = scalar_select %p105_p7, %s628_s14, %s107_s21  }
   0xd   : > { %p160_p10 = pnand %p454_p6, %p159_p9 }
   0xe   : > { %v195_v0 = vld [vmem:[%s799_s1] sm:$0xff] (!%p160_p10)  ;;  %v196_v1 = vld [vmem:[%s799_s1 + $0x8] sm:$0xff] (!%p160_p10)  ;;  %v197_v2 = vld [vmem:[%s799_s1 + $0x10] sm:$0xff] (!%p160_p10)  ;;  %v642_v3 = vmov (!%p160_p10), 0.0|0.0   ;;  %vm643_vm0 = vmmov (!%p160_p10), 0   ;;  %v644_v6 = vmov (!%p160_p10), 0.0  }
   0xf   : > { %163 = sbr.rel (%p160_p10) target bundleno = 776 (0x308), region = 32  ;;  %491 = vmatprep.subr.bf16.mxu0 (!%p160_p10), %v642_v3  ;;  %v492_v4 = vpack.c.bf16 (!%p160_p10), %v196_v1, %v195_v0  ;;  %v198_v5 = vld [vmem:[%s799_s1 + $0x18] sm:$0xff] (!%p160_p10)  ;;  %481 = vmatprep.mubr.msk.f32.mxu0 (!%p160_p10), %vm643_vm0, %v644_v6  ;;  %v194_v8 = vld [vmem:[%s798_s0] sm:$0xff] (!%p160_p10)  ;;  %vm199_vm1 = vcmask (!%p160_p10), 261120   ;;  %vm273_vm2 = vcmask (!%p160_p10), 130048   ;;  %p186_p11 = scmp.lt.s32.totalorder (!%p160_p10), %s632_s15, 1 }
  0x10   : > { %497 = vmatprep.subr.bf16.mxu1 (!%p160_p10), %v642_v3  ;;  %488 = vmatprep.mubr.msk.f32.mxu1 (!%p160_p10), %vm643_vm0, %v644_v6  ;;  %v495_v7 = vpack.c.bf16 (!%p160_p10), %v198_v5, %v197_v2  ;;  %s183_s21 = sand.u32 (!%p160_p10), 1, %s624_s13   ;;  %s461_s26 = sshll.u32 (!%p160_p10), %s632_s15, 7 }
  0x11   : > { %493 = vmatpush3.bf16.msra.mxu0 (!%p160_p10), %v492_v4  ;;  %s455_s23 = sshll.u32 (!%p160_p10), %s183_s21, 3  ;;  %s750_s4 = scalar_lea.hbm (!%p160_p10), %s801_s3, %s461_s26 }
  0x12   : > { %494 = vmatprep.subr.bf16.mxu0 (!%p160_p10), %v642_v3  ;;  %s185_s27 = scalar_lea.vmem (!%p160_p10), [#allocation2], %s455_s23  ;;  %s362_s5 = scalar_lea.sflag (!%p160_p10), [#allocation3], %s183_s21 }
  0x13   : > { %s376_s28 = sshll.u32 (!%p160_p10), %s185_s27, 4  ;;  %s752_s28 = int_to_ptr.vmem [resolvable:$true] %s376_s28 }
  0x14   : > { %s562_s6 = scalar_lea.vmem (!%p160_p10), %s752_s28, 128 }
  0x15   : > { %496 = vmatpush3.bf16.msra.mxu0 (!%p160_p10), %v495_v7  ;;  %p563_p12 = scmp.ne.s32.totalorder (!%p160_p10), %s752_s28, %s562_s6 }
  0x16   : > { %s187_s9 = scalar_select %p186_p11, %s632_s15, 1 }
  0x17   : > { %p564_p13 = pnand %p563_p12, %p706_p4  ;;  %s645_s15 = smov [#allocation2]  }
  0x18   : > { %482 = vmatmul.mubr.msk.f32.vlgmr.msra.gmra.mrb[0].mxu0 %vm199_vm1, %v194_v8  ;;  %s464_s10 = sshll.u32 %s187_s9, 4  ;;  %s566_s7 = sshll.u32 %s645_s15, 4  ;;  %s567_s7 = int_to_ptr.vmem [resolvable:$false] %s566_s7 }
  0x19   : > { %s193_s19 = scalar_lea.vmem %s800_s2, %s464_s10  ;;  %p565_p0 = pneg %p564_p13 }
  0x1a   : > { %v285_v17 = vld [vmem:[%s193_s19] sm:$0xff]  ;;  %v286_v18 = vld [vmem:[%s193_s19 + $0x8] sm:$0xff]  ;;  %s568_s8 = scalar_lea.vmem %s567_s7, 256  ;;  %p569_p1 = scmp.lt.s32.totalorder %s752_s28, %s567_s7 }
  0x1b   : > { %v498_v19 = vpack.c.bf16 %v286_v18, %v285_v17  ;;  %p570_p2 = scmp.lt.s32.totalorder %s568_s8, %s562_s6 }
  0x1d   : > { %499 = vmatpush3.bf16.msra.mxu1 %v498_v19  ;;  %p571_p3 = por %p570_p2, %p569_p1 }
  0x1f   : > { %p572_p5 = pnand %p571_p3, %p565_p0 }
  0xeb   : > { %v269_v9 = vpop.f32.mrb[0].mxu0 }
  0xec   : > { %v483_v10 = vpop.f32.mrb[1].mxu0  ;;  %v274_v11 = vsel %vm273_vm2, %v269_v9, -inf }
  0xed   : > { %275 = vmax.xlane.f32.xlu0 %v274_v11 }
 0x17a   : > { %v276_v12 = vpop.xlane.xlu0 %275 }
 0x17b   : > { %v277_v13 = vsub.f32 %v269_v9, %v276_v12 }
 0x17d   : > { %v278_v14 = vmul.f32 1.442695, %v277_v13 }
 0x17f   : > { %558 = vpow2.f32 %v278_v14 }
 0x189   : > { %v559_v15 = vpop.eup %558 }
 0x18a   : > { %v280_v16 = vsel %vm273_vm2, %v559_v15, 0.0 }
 0x18b   : > { %281 = vadd.xlane.f32.xlu0 %v280_v16 }
 0x218   : > { %v282_v20 = vpop.xlane.xlu0 %281 }
 0x219   : > { %560 = vrcp.f32 %v282_v20 }
 0x223   : > { %v561_v21 = vpop.eup %560 }
 0x224   : > { %v284_v22 = vmul.f32 %v561_v21, %v559_v15 }
 0x226   : > { %489 = vmatmul.mubr.msk.f32.vlgmr.msra.gmra.mrb[0].mxu1 %vm273_vm2, %v284_v22 }
 0x2f9   : > { %v356_v23 = vpop.f32.mrb[0].mxu1 }
 0x2fa   : > { %360 = vst.msk [vmem:[%s185_s27] sm:$0xff] %vm199_vm1, %v356_v23  ;;  %v490_v24 = vpop.f32.mrb[1].mxu1 }
 0x2fb   : > { %575 = shalt.err (!%p572_p5)
}
 0x2fc   : > { %s576_s9 = scalar_lea.hbm %s750_s4, 128  ;;  %s580_s18 = scalar_lea.hbm %s801_s3, 256 }
 0x2fd   : > { %p577_p6 = scmp.ne.s32.totalorder %s750_s4, %s576_s9  ;;  %p581_p10 = scmp.lt.u32.totalorder %s750_s4, %s801_s3 }
 0x2fe   : > { %p582_p11 = scmp.lt.u32.totalorder %s580_s18, %s576_s9  ;;  %p584_p13 = scmp.lt.u32.totalorder %s576_s9, %s750_s4 }
 0x2ff   : > { %p578_p7 = pnand %p577_p6, %p706_p4 }
 0x300   : > { %p583_p12 = por %p582_p11, %p581_p10 }
 0x301   : > { %p579_p9 = pneg %p578_p7 }
 0x302   : > { %p585_p0 = por %p584_p13, %p583_p12 }
 0x304   : > { %p586_p1 = pnand %p585_p0, %p579_p9 }
 0x306   : > { %589 = shalt.err (!%p586_p1)
}
 0x307   : > { %500 = dma.vmem_to_hbm [thread:$0]  (%p706_p4), %s752_s28, 128, %s750_s4, %s362_s5  }
 0x308 PF: > { %p506_p2 = scmp.ge.s32.totalorder %s640_s17, 2  ;;  %s388_s23 = sand.u32 1, %s620_s12  }
 0x309   : > { %s389_s26 = scalar_lea.sflag [#allocation3], %s388_s23 }
 0x30a   : > { %p503_p3 = pnand %p506_p2, %p713_p8 }
 0x30c   : > { %615 = dma.done.wait (!%p503_p3), %s389_s26, 128  }
 0x30d   : > { %617 = vsyncadd (!%p503_p3), %s389_s26, 4294967168  ;;  %s16_s17 = sadd.s32 1, %s640_s17   ;;  %s804_s12 = smov %s624_s13 }
 0x30e   : > { %p13_p5 = scmp.ge.s32.totalorder %s16_s17, 4   ;;  %s805_s13 = smov %s628_s14 }
 0x30f   : > { %s806_s14 = smov %s719_s25  ;;  %s807_s15 = smov %s636_s16 }
 0x310   : > { %s808_s16 = smov %s810_s20  ;;  %15 = sbr.rel (!%p13_p5) target bundleno = 4 (0x4), region = 67 }
 0x317   :  { %394 = vsyncpa [#allocation3], 1 }
 0x318   :  { %396 = vsyncpa [#allocation3 + $0x1], 1 }

</bundles_post_ra>
